<compile_context>
chip_gen: v7x
topology: tpu7x:2x2x1
jax: 0.10.0
libtpu: 0.0.40
codegen_flags: <defaults>
</compile_context>

<pallas_src>
import functools

import jax
import jax.numpy as jnp
from jax.experimental import pallas as pl
from jax.experimental.pallas import tpu as pltpu


# --------------------------------------------------------------------------
# Kernel body
# --------------------------------------------------------------------------
def _patch_merging_kernel(xe_ref, xo_ref, we_ref, wo_ref, b_ref, o_ref,
                          *, eps, inv_4c):
    # xe_ref / xo_ref : (TR, W2, 2C)   even-row / odd-row halves of each 2x2 window
    # we_ref / wo_ref : (2C, E)        reduction weight with LN gamma folded in
    # b_ref           : (1, E)         beta @ W  (folded LN shift), f32
    # o_ref           : (TR*W2, E)     lane/sublane-dense output slab
    xe = xe_ref[...].astype(jnp.float32)
    xo = xo_ref[...].astype(jnp.float32)

    # LayerNorm statistics over the logical 4C merged features (f32 always).
    mean = (jnp.sum(xe, axis=-1, keepdims=True)
            + jnp.sum(xo, axis=-1, keepdims=True)) * inv_4c
    ce = xe - mean
    co = xo - mean
    var = (jnp.sum(ce * ce, axis=-1, keepdims=True)
           + jnp.sum(co * co, axis=-1, keepdims=True)) * inv_4c
    inv = jax.lax.rsqrt(var + eps)

    ne = ce * inv
    no = co * inv

    tr, w2, k2 = ne.shape
    m = tr * w2
    mxu_dt = we_ref.dtype  # bf16 fast path (default) or f32 exact path

    # TODO(synk): when W2 % 8 != 0 (real Swin W2 = 7/14/28) this flatten can
    # force a sublane relayout; benchmark a 3D lax.dot_general alternative.
    acc = jnp.dot(ne.reshape(m, k2).astype(mxu_dt), we_ref[...],
                  preferred_element_type=jnp.float32)
    acc = acc + jnp.dot(no.reshape(m, k2).astype(mxu_dt), wo_ref[...],
                        preferred_element_type=jnp.float32)
    acc = acc + b_ref[...]                      # folded LN beta contribution
    o_ref[...] = acc.astype(o_ref.dtype)


# --------------------------------------------------------------------------
# VMEM-aware tiling helpers
# --------------------------------------------------------------------------
_FALLBACK_VMEM_CAPACITY = 64 * 1024 * 1024   # conservative: v7x per-TensorCore


def _vmem_capacity_bytes():
    try:
        return int(pltpu.get_tpu_info().vmem_capacity_bytes)
    except Exception:
        return _FALLBACK_VMEM_CAPACITY


def _pick_row_tile(R, W2, per_row_bytes, budget_bytes, min_grid_steps=4):
    """Largest divisor of R whose double-buffered streams fit `budget_bytes`,
    capped so the grid has >= min_grid_steps steps (pipelining + megacore),
    preferring tiles whose flattened sublane extent (t*W2) is 8-aligned."""
    cap = max(1, R // min_grid_steps)
    fitting = [t for t in range(1, cap + 1)
               if R % t == 0 and t * per_row_bytes <= budget_bytes]
    if not fitting:
        return 1
    best = max(fitting)
    aligned = [t for t in fitting if (t * W2) % 8 == 0]
    if aligned and max(aligned) * 2 >= best:
        return max(aligned)
    return best


# --------------------------------------------------------------------------
# Module wrapper
# --------------------------------------------------------------------------
class PatchMergingPallas:
    """JAX/Pallas equivalent of the PyTorch PatchMerging module."""

    def __init__(self, input_resolution, dim, key=None, dtype=jnp.float32):
        self.input_resolution = tuple(input_resolution)
        self.dim = dim
        self.eps = 1e-5
        if key is None:
            key = jax.random.PRNGKey(0)
        # nn.Linear(4*dim, 2*dim, bias=False): weight shape [2*dim, 4*dim]
        fan_in = 4 * dim
        bound = 1.0 / (fan_in ** 0.5)
        self.red_w = jax.random.uniform(
            key, (2 * dim, 4 * dim), dtype, -bound, bound)
        # nn.LayerNorm(4*dim)
        self.ln_gamma = jnp.ones((4 * dim,), dtype)
        self.ln_beta = jnp.zeros((4 * dim,), dtype)

    # ---- fold LN affine + cat() permutation into the linear operands -------
    def _folded_params(self, mxu_dtype):
        C = self.dim
        E = 2 * C
        w_mat = self.red_w.T.astype(jnp.float32)              # (4C, E)
        gamma = self.ln_gamma.astype(jnp.float32)
        beta = self.ln_beta.astype(jnp.float32)
        w_g = w_mat * gamma[:, None]                           # fold gamma
        bias = (beta @ w_mat).reshape(1, E)                    # fold beta, f32
        # merged 4C order = [x0 | x1 | x2 | x3]
        #   even rows (parity 0): [x0 | x2] -> rows [0:C] + [2C:3C]
        #   odd  rows (parity 1): [x1 | x3] -> rows [C:2C] + [3C:4C]
        w_e = jnp.concatenate([w_g[0:C], w_g[2 * C:3 * C]], axis=0)
        w_o = jnp.concatenate([w_g[C:2 * C], w_g[3 * C:4 * C]], axis=0)
        return w_e.astype(mxu_dtype), w_o.astype(mxu_dtype), bias

    def __call__(self, x, row_tile=None, mxu_bf16=True):
        H, W = self.input_resolution
        B, L, C = x.shape
        assert L == H * W, "input feature has wrong size"
        assert H % 2 == 0 and W % 2 == 0, f"x size ({H}*{W}) are not even."
        assert C == self.dim

        H2, W2 = H // 2, W // 2
        E = 2 * C            # output features
        K2 = 2 * C           # per-parity-half feature width
        R = B * H2           # row units; each carries W2 merged tokens
        M = R * W2           # total merged tokens

        # ---- free contiguous reshape (no transpose, no HBM round trip) -----
        # [B, H*W, C] == [B, H2, 2, W2, 2, C] -> [B*H2, 2, W2, 2C]
        x_r = x.reshape(R, 2, W2, 2 * C)

        mxu_dtype = jnp.bfloat16 if mxu_bf16 else jnp.float32
        w_e, w_o, bias = self._folded_params(mxu_dtype)
        w_isz = jnp.dtype(mxu_dtype).itemsize
        x_isz = x.dtype.itemsize
        out_isz = x.dtype.itemsize

        # ---- VMEM accounting ------------------------------------------------
        capacity = _vmem_capacity_bytes()              # 64 MiB v7x, 128 MiB v5e/v6e
        vmem_limit = min(int(capacity * 0.70), capacity - (16 << 20))
        # grid-invariant operands (Pallas still double-buffers them) + bias
        fixed_bytes = 2 * (2 * K2 * E * w_isz) + 2 * E * 4
        margin = 4 << 20                               # Mosaic internal scratch
        budget = max(0, vmem_limit - fixed_bytes - margin)
        # per row-unit streaming bytes: 2 input streams + 1 output, x2 buffers
        per_row = W2 * (2 * 2 * (2 * C) * x_isz + 2 * E * out_isz)

        if row_tile is None:
            row_tile = _pick_row_tile(R, W2, per_row, budget)
        assert R % row_tile == 0, (R, row_tile)
        grid = (R // row_tile,)

        # make sure the scoped limit covers what we actually allocate
        vmem_limit = max(vmem_limit, fixed_bytes + row_tile * per_row + margin)

        # ---- BlockSpecs ------------------------------------------------------
        x_blk = (row_tile, None, W2, 2 * C)   # None squeezes the parity dim
        even_spec = pl.BlockSpec(x_blk, lambda i: (i, 0, 0, 0))
        odd_spec = pl.BlockSpec(x_blk, lambda i: (i, 1, 0, 0))
        w_spec = pl.BlockSpec((K2, E), lambda i: (0, 0))
        b_spec = pl.BlockSpec((1, E), lambda i: (0, 0))
        out_spec = pl.BlockSpec((row_tile * W2, E), lambda i: (i, 0))

        cost = pl.CostEstimate(
            flops=2 * M * (4 * C) * E + M * E,
            transcendentals=M,
            bytes_accessed=(M * 4 * C * x_isz + M * E * out_isz
                            + 2 * K2 * E * w_isz + E * 4))

        kernel = functools.partial(
            _patch_merging_kernel, eps=self.eps, inv_4c=1.0 / (4.0 * C))

        out = pl.pallas_call(
            kernel,
            grid=grid,
            in_specs=[even_spec, odd_spec, w_spec, w_spec, b_spec],
            out_specs=out_spec,
            out_shape=jax.ShapeDtypeStruct((M, E), x.dtype),
            compiler_params=pltpu.CompilerParams(
                dimension_semantics=("parallel",),
                vmem_limit_bytes=int(vmem_limit)),
            cost_estimate=cost,
        )(x_r, x_r, w_e, w_o, bias)

        return out.reshape(B, H2 * W2, E)   # free contiguous reshape


# --------------------------------------------------------------------------
# Pure-JAX reference (mirrors the PyTorch forward)
# --------------------------------------------------------------------------
def _reference_forward(module, x):
    H, W = module.input_resolution
    B, L, C = x.shape
    xr = x.reshape(B, H, W, C)
    x0 = xr[:, 0::2, 0::2, :]
    x1 = xr[:, 1::2, 0::2, :]
    x2 = xr[:, 0::2, 1::2, :]
    x3 = xr[:, 1::2, 1::2, :]
    xc = jnp.concatenate([x0, x1, x2, x3], axis=-1).reshape(B, -1, 4 * C)
    mean = jnp.mean(xc, axis=-1, keepdims=True)
    var = jnp.mean((xc - mean) ** 2, axis=-1, keepdims=True)
    xn = (xc - mean) / jnp.sqrt(var + module.eps)
    xn = xn * module.ln_gamma + module.ln_beta
    return xn @ module.red_w.T


if __name__ == "__main__":
    key = jax.random.PRNGKey(0)
    k_param, k_x = jax.random.split(key)

    # Small shapes consistent with the module: B=2, dim=32, 16x16 resolution
    # -> x [2, 256, 32], output [2, 64, 64].
    B, DIM, H, W = 2, 32, 16, 16
    x = jax.random.normal(k_x, (B, H * W, DIM), dtype=jnp.float32)

    module = PatchMergingPallas((H, W), DIM, key=k_param)
    ref = _reference_forward(module, x)

    # Exact-semantics path (f32 MXU operands) — tight tolerance.
    out_f32 = jax.block_until_ready(module(x, mxu_bf16=False))
    assert out_f32.shape == (B, (H // 2) * (W // 2), 2 * DIM), out_f32.shape
    assert jnp.allclose(out_f32, ref, atol=1e-4, rtol=1e-4), "f32 mismatch"

    # Default fast path: bf16 MXU operands, f32 accumulation — looser tolerance.
    out_bf16 = jax.block_until_ready(module(x))
    assert out_bf16.shape == (B, (H // 2) * (W // 2), 2 * DIM), out_bf16.shape
    assert jnp.allclose(out_bf16, ref, atol=3e-2, rtol=3e-2), "bf16 mismatch"

    # Explicit small tile -> exercises a longer pipelined grid (grid=(8,)).
    out_tiled = jax.block_until_ready(module(x, row_tile=2, mxu_bf16=False))
    assert jnp.allclose(out_tiled, ref, atol=1e-4, rtol=1e-4), "tiled mismatch"

    print("KERNEL_OK")
</pallas_src>

<mosaic_0001>
module attributes {stable_mosaic.version = 11 : i64} {
  func.func @_patch_merging_kernel(%arg0: i32, %arg1: memref<4x1x8x64xf32, #tpu.memory_space<vmem>>, %arg2: memref<4x1x8x64xf32, #tpu.memory_space<vmem>>, %arg3: memref<64x64xf32, #tpu.memory_space<vmem>>, %arg4: memref<64x64xf32, #tpu.memory_space<vmem>>, %arg5: memref<1x64xf32, #tpu.memory_space<vmem>>, %arg6: memref<32x64xf32, #tpu.memory_space<vmem>>) attributes {dimension_semantics = [#tpu.dimension_semantics<parallel>], iteration_bounds = array<i64: 4>, scalar_prefetch = 0 : i64, scratch_operands = 0 : i64, tpu.core_type = #tpu.core_type<tc>, window_params = [{transform_indices = @transform_0, window_bounds = array<i64: 4, 1, 8, 64>}, {transform_indices = @transform_1, window_bounds = array<i64: 4, 1, 8, 64>}, {pipeline_mode = #tpu.pipeline_mode<synchronous>, transform_indices = @transform_2, window_bounds = array<i64: 64, 64>}, {pipeline_mode = #tpu.pipeline_mode<synchronous>, transform_indices = @transform_3, window_bounds = array<i64: 64, 64>}, {pipeline_mode = #tpu.pipeline_mode<synchronous>, transform_indices = @transform_4, window_bounds = array<i64: 1, 64>}, {transform_indices = @transform_5, window_bounds = array<i64: 32, 64>}]} {
    %c0 = arith.constant 0 : index
    %c0_0 = arith.constant 0 : index
    %c0_1 = arith.constant 0 : index
    %c0_2 = arith.constant 0 : index
    %0 = vector.load %arg1[%c0, %c0_0, %c0_1, %c0_2] : memref<4x1x8x64xf32, #tpu.memory_space<vmem>>, vector<4x1x8x64xf32>
    %1 = vector.shape_cast %0 : vector<4x1x8x64xf32> to vector<4x8x64xf32>
    %c0_3 = arith.constant 0 : index
    %c0_4 = arith.constant 0 : index
    %c0_5 = arith.constant 0 : index
    %c0_6 = arith.constant 0 : index
    %2 = vector.load %arg2[%c0_3, %c0_4, %c0_5, %c0_6] : memref<4x1x8x64xf32, #tpu.memory_space<vmem>>, vector<4x1x8x64xf32>
    %3 = vector.shape_cast %2 : vector<4x1x8x64xf32> to vector<4x8x64xf32>
    %cst = arith.constant dense<0.000000e+00> : vector<4x8xf32>
    %4 = vector.multi_reduction <add>, %1, %cst [2] : vector<4x8x64xf32> to vector<4x8xf32>
    %5 = vector.shape_cast %4 : vector<4x8xf32> to vector<4x8x1xf32>
    %cst_7 = arith.constant dense<0.000000e+00> : vector<4x8xf32>
    %6 = vector.multi_reduction <add>, %3, %cst_7 [2] : vector<4x8x64xf32> to vector<4x8xf32>
    %7 = vector.shape_cast %6 : vector<4x8xf32> to vector<4x8x1xf32>
    %8 = arith.addf %5, %7 : vector<4x8x1xf32>
    %cst_8 = arith.constant 7.812500e-03 : f32
    %9 = vector.broadcast %cst_8 : f32 to vector<4x8x1xf32>
    %10 = arith.mulf %8, %9 : vector<4x8x1xf32>
    %11 = vector.broadcast %10 : vector<4x8x1xf32> to vector<4x8x64xf32>
    %12 = arith.subf %1, %11 : vector<4x8x64xf32>
    %13 = vector.broadcast %10 : vector<4x8x1xf32> to vector<4x8x64xf32>
    %14 = arith.subf %3, %13 : vector<4x8x64xf32>
    %15 = arith.mulf %12, %12 : vector<4x8x64xf32>
    %cst_9 = arith.constant dense<0.000000e+00> : vector<4x8xf32>
    %16 = vector.multi_reduction <add>, %15, %cst_9 [2] : vector<4x8x64xf32> to vector<4x8xf32>
    %17 = vector.shape_cast %16 : vector<4x8xf32> to vector<4x8x1xf32>
    %18 = arith.mulf %14, %14 : vector<4x8x64xf32>
    %cst_10 = arith.constant dense<0.000000e+00> : vector<4x8xf32>
    %19 = vector.multi_reduction <add>, %18, %cst_10 [2] : vector<4x8x64xf32> to vector<4x8xf32>
    %20 = vector.shape_cast %19 : vector<4x8xf32> to vector<4x8x1xf32>
    %21 = arith.addf %17, %20 : vector<4x8x1xf32>
    %cst_11 = arith.constant 7.812500e-03 : f32
    %22 = vector.broadcast %cst_11 : f32 to vector<4x8x1xf32>
    %23 = arith.mulf %21, %22 : vector<4x8x1xf32>
    %cst_12 = arith.constant 9.99999974E-6 : f32
    %24 = vector.broadcast %cst_12 : f32 to vector<4x8x1xf32>
    %25 = arith.addf %23, %24 : vector<4x8x1xf32>
    %26 = math.rsqrt %25 : vector<4x8x1xf32>
    %27 = vector.broadcast %26 : vector<4x8x1xf32> to vector<4x8x64xf32>
    %28 = arith.mulf %12, %27 : vector<4x8x64xf32>
    %29 = vector.broadcast %26 : vector<4x8x1xf32> to vector<4x8x64xf32>
    %30 = arith.mulf %14, %29 : vector<4x8x64xf32>
    %31 = vector.shape_cast %28 : vector<4x8x64xf32> to vector<32x64xf32>
    %c0_13 = arith.constant 0 : index
    %c0_14 = arith.constant 0 : index
    %32 = vector.load %arg3[%c0_13, %c0_14] : memref<64x64xf32, #tpu.memory_space<vmem>>, vector<64x64xf32>
    %cst_15 = arith.constant dense<0.000000e+00> : vector<32x64xf32>
    %33 = tpu.matmul %31, %32, %cst_15 {dimension_numbers = #tpu.dot_dimension_numbers<[1], [0], [0], [1], [0, 0, 1, 1], [], []>} : vector<32x64xf32>, vector<64x64xf32>, vector<32x64xf32> -> vector<32x64xf32>
    %34 = vector.shape_cast %30 : vector<4x8x64xf32> to vector<32x64xf32>
    %c0_16 = arith.constant 0 : index
    %c0_17 = arith.constant 0 : index
    %35 = vector.load %arg4[%c0_16, %c0_17] : memref<64x64xf32, #tpu.memory_space<vmem>>, vector<64x64xf32>
    %cst_18 = arith.constant dense<0.000000e+00> : vector<32x64xf32>
    %36 = tpu.matmul %34, %35, %cst_18 {dimension_numbers = #tpu.dot_dimension_numbers<[1], [0], [0], [1], [0, 0, 1, 1], [], []>} : vector<32x64xf32>, vector<64x64xf32>, vector<32x64xf32> -> vector<32x64xf32>
    %37 = arith.addf %33, %36 : vector<32x64xf32>
    %c0_19 = arith.constant 0 : index
    %c0_20 = arith.constant 0 : index
    %38 = vector.load %arg5[%c0_19, %c0_20] : memref<1x64xf32, #tpu.memory_space<vmem>>, vector<1x64xf32>
    %39 = vector.broadcast %38 : vector<1x64xf32> to vector<32x64xf32>
    %40 = arith.addf %37, %39 : vector<32x64xf32>
    %c0_21 = arith.constant 0 : index
    %c0_22 = arith.constant 0 : index
    %41 = vector.load %arg6[%c0_21, %c0_22] : memref<32x64xf32, #tpu.memory_space<vmem>>, vector<32x64xf32>
    tpu.vector_store %arg6[%c0_21, %c0_22], %40 {strides = array<i32>} : memref<32x64xf32, #tpu.memory_space<vmem>>, vector<32x64xf32>,
    return
  }
  func.func @transform_0(%arg0: i32) -> (i32, i32, i32, i32) {
    %c0_i32 = arith.constant 0 : i32
    %c0_i32_0 = arith.constant 0 : i32
    %c0_i32_1 = arith.constant 0 : i32
    %c0_i32_2 = arith.constant 0 : i32
    return %arg0, %c0_i32, %c0_i32_0, %c0_i32_1 : i32, i32, i32, i32
  }
  func.func @transform_1(%arg0: i32) -> (i32, i32, i32, i32) {
    %c1_i32 = arith.constant 1 : i32
    %c0_i32 = arith.constant 0 : i32
    %c0_i32_0 = arith.constant 0 : i32
    %c0_i32_1 = arith.constant 0 : i32
    return %arg0, %c1_i32, %c0_i32, %c0_i32_0 : i32, i32, i32, i32
  }
  func.func @transform_2(%arg0: i32) -> (i32, i32) {
    %c0_i32 = arith.constant 0 : i32
    %c0_i32_0 = arith.constant 0 : i32
    %c0_i32_1 = arith.constant 0 : i32
    return %c0_i32, %c0_i32_0 : i32, i32
  }
  func.func @transform_3(%arg0: i32) -> (i32, i32) {
    %c0_i32 = arith.constant 0 : i32
    %c0_i32_0 = arith.constant 0 : i32
    %c0_i32_1 = arith.constant 0 : i32
    return %c0_i32, %c0_i32_0 : i32, i32
  }
  func.func @transform_4(%arg0: i32) -> (i32, i32) {
    %c0_i32 = arith.constant 0 : i32
    %c0_i32_0 = arith.constant 0 : i32
    %c0_i32_1 = arith.constant 0 : i32
    return %c0_i32, %c0_i32_0 : i32, i32
  }
  func.func @transform_5(%arg0: i32) -> (i32, i32) {
    %c0_i32 = arith.constant 0 : i32
    %c0_i32_0 = arith.constant 0 : i32
    return %arg0, %c0_i32 : i32, i32
  }
}

</mosaic_0001>

<bundles_post_ra>
// kernel: tpu_custom_call.1
= control target key start
LH: loop header
LB: loop body
LE: loop exit
PB: predicated region body
PF: predicated region fallthrough
CT: control target
= control target key end

     0   :  { %s1493_s0 = inlined_call_operand.hbm [shape: f32[16,2,8,64], index: 0, kind: input, shape index: {}]   ;;  %s1494_s1 = inlined_call_operand.hbm [shape: f32[16,2,8,64], index: 1, kind: input, shape index: {}]   ;;  %s1495_s2 = inlined_call_operand.hbm [shape: f32[64,64], index: 2, kind: input, shape index: {}]   ;;  %s1496_s3 = inlined_call_operand.hbm [shape: f32[64,64], index: 3, kind: input, shape index: {}]   ;;  %s1497_s4 = inlined_call_operand.vmem [shape: f32[1,64], index: 4, kind: input, shape index: {}]   ;;  %s1498_s5 = inlined_call_operand.vmem [shape: f32[128,64], index: 5, kind: output, shape index: {}]  }
   0x1   :  { %1503 = sst [smem:[#allocation13_spill]] %s1493_s0 }
   0x2   :  { %10 = vsyncpa [#allocation3], 0 }
   0x3   :  { %12 = vsyncpa [#allocation3 + $0x1], 0 }
   0x4   :  { %13 = vsyncpa [#allocation5], 0 }
   0x5   :  { %15 = vsyncpa [#allocation5 + $0x1], 0 }
   0x6   :  { %16 = vsyncpa [#allocation8], 0  ;;  %s1177_s18 = smov 0   ;;  %s1179_s19 = smov 0  }
   0x7   :  { %s1181_s20 = smov 0   ;;  %s1183_s21 = smov 0  }
   0x8 LB: > { %s1196_s22 = sadd.s32 4294967295, %s1138_s21   ;;  %s1199_s23 = sadd.s32 1, %s1138_s21   ;;  %s1138_s21 = sphi %s1183_s21, %s1520_s21   ;;  %s1134_s20 = sphi %s1181_s20, %s1519_s20   ;;  %s1130_s19 = sphi %s1179_s19, %s1518_s19   ;;  %s1126_s18 = sphi %s1177_s18, %s1517_s18  }
   0x9   : > { %s26_s24 = ssub.s32 %s1138_s21, %s1199_s23  ;;  %s29_s25 = sadd.s32 1, %s1134_s20 }
   0xa   : > { %p27_p0 = scmp.eq.s32.totalorder %s26_s24, 0  ;;  %p36_p1 = scmp.ne.s32.totalorder %s1134_s20, %s1130_s19 }
   0xb   : > { %p37_p2 = scmp.eq.s32.totalorder %s1138_s21, 0  ;;  %p42_p3 = scmp.ne.s32.totalorder %s1130_s19, %s1126_s18 }
   0xc   : > { %s1209_s26 = scalar_select %p27_p0, %s1134_s20, %s29_s25  }
   0xd   : > { %p1211_p4 = por %p37_p2, %p36_p1  ;;  %p1499_p5 = scmp.eq.s32.totalorder %s1196_s22, 0 }
   0xe   : > { %p763_p6 = scmp.ge.s32.totalorder %s1138_s21, 1  ;;  %p168_p7 = scmp.lt.s32.totalorder %s1138_s21, 5 }
   0xf   : > { %p1220_p8 = por %p1499_p5, %p42_p3  ;;  %s1140_s30 = smov [#allocation6]  }
  0x10   : > { %p1224_p9 = pnand %p763_p6, %p168_p7  ;;  %s180_s6 = sshll.u32 %s1140_s30, 4  ;;  %s181_s6 = int_to_ptr.vmem [resolvable:$true] %s180_s6 }
  0x11   : > { %s1505_s28 = scalar_select %p1220_p8, 1, 0 }
  0x12   : > { %s1506_s29 = scalar_select %p1224_p9, 1, 0 }
  0x13   : > { %p911_p10 = pneg %p1224_p9  ;;  %p927_p12 = scmp.lt.s32.totalorder %s1138_s21, 4 }
  0x14   : > { %s210_s8 = sand.u32 1, %s1134_s20   ;;  %s975_s12 = scalar_lea.hbm %s1495_s2, 1024 }
  0x15   : > { %p1232_p11 = pnand %p911_p10, %p1499_p5  ;;  %p1240_p13 = pnand %p927_p12, %p1211_p4 }
  0x16   : > { %p976_p0 = scmp.ne.s32.totalorder %s1495_s2, %s975_s12  ;;  %p982_p4 = scmp.lt.u32.totalorder %s975_s12, %s1495_s2 }
  0x17   : > { %s1508_s9 = scalar_select %p1240_p13, 1, 0 }
  0x18   : > { %p977_p1 = pneg %p1232_p11 }
  0x1a   : > { %p978_p2 = pnand %p977_p1, %p976_p0 }
  0x1c   : > { %p979_p3 = pneg %p978_p2 }
  0x1e   : > { %p984_p6 = pnand %p982_p4, %p979_p3 }
  0x20   : > { %987 = shalt.err (!%p984_p6)
}
  0x21   : > { %s988_s17 = scalar_lea.vmem %s181_s6, 1024  ;;  %p996_p5 = scmp.lt.s32.totalorder %s181_s6, %s181_s6 }
  0x22   : > { %p989_p7 = scmp.ne.s32.totalorder %s181_s6, %s988_s17  ;;  %p997_p8 = scmp.lt.s32.totalorder %s988_s17, %s988_s17 }
  0x24   : > { %p991_p10 = pnand %p989_p7, %p977_p1  ;;  %p998_p9 = por %p997_p8, %p996_p5 }
  0x26   : > { %p992_p12 = pneg %p991_p10 }
  0x28   : > { %p999_p13 = pnand %p998_p9, %p992_p12 }
  0x2a   : > { %1002 = shalt.err (!%p999_p13)
}
  0x2b   : > { %s1141_s18 = smov 128   ;;  %s1142_s24 = smov 8  }
  0x2c   : > { %914 = dma.hbm_to_vmem [thread:$0]  (!%p1232_p11), %s1495_s2, 1024, %s181_s6, [#allocation5], %s1141_s18, %s1141_s18, %s1142_s24  }
  0x2d   : > { %s1143_s30 = smov [#allocation7]   ;;  %s1003_s13 = scalar_lea.hbm %s1496_s3, 1024 }
  0x2e   : > { %s193_s10 = sshll.u32 %s1143_s30, 4  ;;  %p1004_p5 = scmp.ne.s32.totalorder %s1496_s3, %s1003_s13  ;;  %s194_s10 = int_to_ptr.vmem [resolvable:$true] %s193_s10 }
  0x2f   : > { %p1010_p13 = scmp.lt.u32.totalorder %s1003_s13, %s1496_s3 }
  0x30   : > { %p1006_p8 = pnand %p1004_p5, %p977_p1 }
  0x32   : > { %p1007_p9 = pneg %p1006_p8 }
  0x34   : > { %p1012_p0 = pnand %p1010_p13, %p1007_p9 }
  0x36   : > { %1015 = shalt.err (!%p1012_p0)
}
  0x37   : > { %s1016_s6 = scalar_lea.vmem %s194_s10, 1024  ;;  %p1024_p6 = scmp.lt.s32.totalorder %s194_s10, %s194_s10 }
  0x38   : > { %p1017_p2 = scmp.ne.s32.totalorder %s194_s10, %s1016_s6  ;;  %p1025_p7 = scmp.lt.s32.totalorder %s1016_s6, %s1016_s6 }
  0x3a   : > { %p1019_p3 = pnand %p1017_p2, %p977_p1  ;;  %p1026_p10 = por %p1025_p7, %p1024_p6 }
  0x3c   : > { %p1020_p4 = pneg %p1019_p3 }
  0x3e   : > { %p1027_p12 = pnand %p1026_p10, %p1020_p4 }
  0x40   : > { %1030 = shalt.err (!%p1027_p12)
}
  0x41   : > { %917 = dma.hbm_to_vmem [thread:$0]  (!%p1232_p11), %s1496_s3, 1024, %s194_s10, [#allocation8], %s1141_s18, %s1141_s18, %s1142_s24  }
  0x42   : > { %s1294_s30 = sshll.u32 %s210_s8, 5  ;;  %s793_s11 = sshll.u32 %s1138_s21, 10 }
  0x43   : > { %s1509_s0 = sld [smem:[#allocation13_spill]]  ;;  %s214_s14 = scalar_lea.vmem [#allocation2], %s1294_s30 }
  0x44   : > { %s222_s15 = sshll.u32 %s214_s14, 4  ;;  %s1309_s10 = scalar_lea.sflag [#allocation3], %s210_s8  ;;  %s1305_s15 = int_to_ptr.vmem [resolvable:$true] %s222_s15 }
  0x45   : > { %p1510_p1 = scmp.ne.s32.totalorder %s1508_s9, 0 }
  0x47   : > { %p1033_p5 = pneg %p1510_p1 }
  0x49   : > { %s1302_s13 = scalar_lea.hbm %s1509_s0, %s793_s11  ;;  %s1036_s25 = scalar_lea.hbm %s1509_s0, 4096 }
  0x4a   : > { %s1031_s16 = scalar_lea.hbm %s1302_s13, 512  ;;  %p1037_p13 = scmp.lt.u32.totalorder %s1302_s13, %s1509_s0 }
  0x4b   : > { %p1032_p11 = scmp.ne.s32.totalorder %s1302_s13, %s1031_s16  ;;  %p1038_p0 = scmp.lt.u32.totalorder %s1036_s25, %s1031_s16 }
  0x4c   : > { %p1040_p3 = scmp.lt.u32.totalorder %s1031_s16, %s1302_s13 }
  0x4d   : > { %p1034_p8 = pnand %p1033_p5, %p1032_p11  ;;  %p1039_p2 = por %p1038_p0, %p1037_p13 }
  0x4f   : > { %p1035_p9 = pneg %p1034_p8  ;;  %p1041_p4 = por %p1040_p3, %p1039_p2 }
  0x51   : > { %p1042_p6 = pnand %p1041_p4, %p1035_p9 }
  0x53   : > { %1045 = shalt.err (!%p1042_p6)
}
  0x54   : > { %s1046_s8 = scalar_lea.vmem %s1305_s15, 512  ;;  %s1144_s12 = smov [#allocation2]  }
  0x55   : > { %p1047_p7 = scmp.ne.s32.totalorder %s1305_s15, %s1046_s8  ;;  %s1051_s14 = sshll.u32 %s1144_s12, 4  ;;  %s1052_s14 = int_to_ptr.vmem [resolvable:$false] %s1051_s14 }
  0x56   : > { %s1053_s17 = scalar_lea.vmem %s1052_s14, 1024  ;;  %p1054_p11 = scmp.lt.s32.totalorder %s1305_s15, %s1052_s14 }
  0x57   : > { %p1049_p10 = pnand %p1047_p7, %p1033_p5  ;;  %p1055_p8 = scmp.lt.s32.totalorder %s1053_s17, %s1046_s8 }
  0x59   : > { %p1050_p12 = pneg %p1049_p10  ;;  %p1056_p13 = por %p1055_p8, %p1054_p11 }
  0x5b   : > { %p1057_p0 = pnand %p1056_p13, %p1050_p12 }
  0x5d   : > { %1060 = shalt.err (!%p1057_p0)
}
  0x5e   : > { %s1145_s16 = smov 256   ;;  %s689_s27 = scalar_lea.hbm %s1494_s1, %s793_s11 }
  0x5f   : > { %921 = dma.hbm_to_vmem [thread:$0]  (!%p1510_p1), %s1302_s13, 512, %s1305_s15, %s1309_s10, %s1145_s16, %s1141_s18, %s1142_s24  }
  0x60   : > { %s236_s7 = scalar_lea.vmem [#allocation4], %s1294_s30  ;;  %s1346_s12 = scalar_lea.hbm %s689_s27, 128 }
  0x61   : > { %s245_s8 = sshll.u32 %s236_s7, 4  ;;  %s232_s14 = sand.u32 1, %s1138_s21   ;;  %s1348_s8 = int_to_ptr.vmem [resolvable:$true] %s245_s8 }
  0x62   : > { %s1351_s17 = scalar_lea.sflag [#allocation5], %s232_s14  ;;  %s1091_s0 = scalar_lea.hbm %s689_s27, 640 }
  0x63   : > { %p1062_p9 = scmp.ne.s32.totalorder %s1346_s12, %s1091_s0  ;;  %s1066_s30 = scalar_lea.hbm %s1494_s1, 4096 }
  0x64   : > { %p1067_p4 = scmp.lt.u32.totalorder %s1346_s12, %s1494_s1  ;;  %p1068_p6 = scmp.lt.u32.totalorder %s1066_s30, %s1091_s0 }
  0x65   : > { %p1064_p2 = pnand %p1062_p9, %p1033_p5  ;;  %p1070_p10 = scmp.lt.u32.totalorder %s1091_s0, %s1346_s12 }
  0x66   : > { %p1069_p7 = por %p1068_p6, %p1067_p4 }
  0x67   : > { %p1065_p3 = pneg %p1064_p2 }
  0x68   : > { %p1071_p12 = por %p1070_p10, %p1069_p7 }
  0x6a   : > { %p1072_p11 = pnand %p1071_p12, %p1065_p3 }
  0x6c   : > { %1075 = shalt.err (!%p1072_p11)
}
  0x6d   : > { %s1076_s21 = scalar_lea.vmem %s1348_s8, 512  ;;  %s1146_s6 = smov [#allocation4]  }
  0x6e   : > { %p1077_p8 = scmp.ne.s32.totalorder %s1348_s8, %s1076_s21  ;;  %s1081_s25 = sshll.u32 %s1146_s6, 4  ;;  %s1082_s25 = int_to_ptr.vmem [resolvable:$false] %s1081_s25 }
  0x6f   : > { %s1083_s27 = scalar_lea.vmem %s1082_s25, 1024  ;;  %p1084_p9 = scmp.lt.s32.totalorder %s1348_s8, %s1082_s25 }
  0x70   : > { %p1079_p13 = pnand %p1077_p8, %p1033_p5  ;;  %p1085_p2 = scmp.lt.s32.totalorder %s1083_s27, %s1076_s21 }
  0x72   : > { %p1080_p0 = pneg %p1079_p13  ;;  %p1086_p4 = por %p1085_p2, %p1084_p9 }
  0x74   : > { %p1087_p6 = pnand %p1086_p4, %p1080_p0 }
  0x76   : > { %1090 = shalt.err (!%p1087_p6)
}
  0x77   : > { %924 = dma.hbm_to_vmem [thread:$0]  (!%p1510_p1), %s1346_s12, 512, %s1348_s8, %s1351_s17, %s1145_s16, %s1141_s18, %s1142_s24  }
  0x78   : > { %p1511_p5 = scmp.ne.s32.totalorder %s1506_s29, 0 }
  0x79   : > { %s259_s0 = sand.u32 (!%p1511_p5), 1, %s1130_s19   ;;  %p1512_p3 = scmp.ne.s32.totalorder (!%p1511_p5), %s1505_s28, 0 }
  0x7a   : > { %257 = sbr.rel (%p1511_p5) target bundleno = 687 (0x2af), region = 40  ;;  %s775_s7 = sshll.u32 (!%p1511_p5), %s259_s0, 5 }
  0x7b   : > { %s260_s14 = scalar_lea.sflag (!%p1511_p5), [#allocation3], %s259_s0  ;;  %s1382_s13 = scalar_lea.vmem (!%p1511_p5), [#allocation2], %s775_s7 }
  0x81   : > { %1109 = dma.done.wait (%p1512_p3), %s260_s14, 512  }
  0x82   : > { %1111 = vsyncadd (%p1512_p3), %s260_s14, 4294966784  ;;  %s268_s9 = sand.u32 1, %s1196_s22   ;;  %s272_s18 = scalar_lea.vmem [#allocation4], %s775_s7 }
  0x83   : > { %s269_s11 = scalar_lea.sflag [#allocation5], %s268_s9 }
  0x84   : > { %1113 = dma.done.wait (%p1512_p3), %s269_s11, 512  }
  0x85   : > { %1115 = vsyncadd (%p1512_p3), %s269_s11, 4294966784  ;;  %p1513_p1 = scmp.eq.s32.totalorder %s1196_s22, 0 }
  0x87   : > { %1117 = dma.done.wait (%p1513_p1), [#allocation5], 1024   ;;  %p1514_p7 = pmov %p1513_p1 }
  0x88   : > { %p1515_p10 = pmov %p1513_p1 }
  0x89   : > { %1119 = vsyncadd (%p1514_p7), [#allocation5], 4294966272 }
  0x8a   : > { %1121 = dma.done.wait (%p1515_p10), [#allocation8], 1024   ;;  %p1516_p12 = pmov %p1513_p1 }
  0x8b   : > { %vm328_vm0 = vcmask 523264   ;;  %v321_v0 = vld [vmem:[%s1382_s13 + $0x8] sm:$0xff]  ;;  %v320_v1 = vld [vmem:[%s1382_s13] sm:$0xff]  ;;  %v326_v8 = vld [vmem:[%s272_s18 + $0x10] sm:$0xff]  ;;  %s779_s28 = sshll.u32 %s1196_s22, 2 }
  0x8c   : > { %1123 = vsyncadd (%p1516_p12), [#allocation8], 4294966272  ;;  %v325_v2 = vld [vmem:[%s272_s18 + $0x8] sm:$0xff]  ;;  %v332_v3 = vsel %vm328_vm0, %v321_v0, 0.0  ;;  %v329_v4 = vsel %vm328_vm0, %v320_v1, 0.0  ;;  %v324_v5 = vld [vmem:[%s272_s18] sm:$0xff] }
  0x8d   : > { %333 = vadd.xlane.f32.xlu1 %v332_v3  ;;  %330 = vadd.xlane.f32.xlu0 %v329_v4  ;;  %v344_v6 = vsel %vm328_vm0, %v325_v2, 0.0  ;;  %v341_v7 = vsel %vm328_vm0, %v324_v5, 0.0  ;;  %v322_v9 = vld [vmem:[%s1382_s13 + $0x10] sm:$0xff]  ;;  %v347_v10 = vsel %vm328_vm0, %v326_v8, 0.0  ;;  %v327_v12 = vld [vmem:[%s272_s18 + $0x18] sm:$0xff]  ;;  %v433_v56 = vld [vmem:[#allocation7] sm:$0xff] }
  0x8e   : > { %v335_v11 = vsel %vm328_vm0, %v322_v9, 0.0  ;;  %v323_v13 = vld [vmem:[%s1382_s13 + $0x18] sm:$0xff]  ;;  %v350_v14 = vsel %vm328_vm0, %v327_v12, 0.0  ;;  %v434_v57 = vld [vmem:[#allocation7 + $0x8] sm:$0xff]  ;;  %v425_v58 = vld [vmem:[#allocation6] sm:$0xff]  ;;  %p315_p11 = scmp.lt.s32.totalorder %s779_s28, 15 }
  0x8f   : > { %v338_v15 = vsel %vm328_vm0, %v323_v13, 0.0  ;;  %v863_v59 = vpack.c.bf16 %v434_v57, %v433_v56  ;;  %v426_v60 = vld [vmem:[#allocation6 + $0x8] sm:$0xff]  ;;  %v435_v62 = vld [vmem:[#allocation7 + $0x10] sm:$0xff]  ;;  %v436_v63 = vld [vmem:[#allocation7 + $0x18] sm:$0xff] }
  0x90   : > { %v879_v61 = vpack.c.bf16 %v426_v60, %v425_v58  ;;  %v437_v4 = vld [vmem:[#allocation7 + $0x20] sm:$0xff]  ;;  %s1522_s28 = smov (!%p315_p11, %s779_s28), 15 }
  0x91   : > { %345 = vadd.xlane.f32.xlu1 %v344_v6  ;;  %342 = vadd.xlane.f32.xlu0 %v341_v7  ;;  %v429_v6 = vld [vmem:[#allocation6 + $0x20] sm:$0xff]  ;;  %s780_s29 = sshll.u32 %s1522_s28, 3 }
  0x92   : > { %864 = vmatprep.subr.bf16.mxu1 %v863_v59  ;;  %880 = vmatprep.subr.bf16.mxu0 %v879_v61  ;;  %s318_s17 = scalar_lea.vmem %s1498_s5, %s780_s29 }
  0x93   : > { %866 = vmatpush3.bf16.msra.mxu1 %v863_v59  ;;  %882 = vmatpush3.bf16.msra.mxu0 %v879_v61 }
  0x95   : > { %348 = vadd.xlane.f32.xlu1 %v347_v10  ;;  %336 = vadd.xlane.f32.xlu0 %v335_v11  ;;  %v439_v10 = vld [vmem:[#allocation7 + $0x30] sm:$0xff]  ;;  %v440_v11 = vld [vmem:[#allocation7 + $0x38] sm:$0xff] }
  0x99   : > { %351 = vadd.xlane.f32.xlu1 %v350_v14  ;;  %339 = vadd.xlane.f32.xlu0 %v338_v15  ;;  %v432_v14 = vld [vmem:[#allocation6 + $0x38] sm:$0xff] }
 0x11a   : > { %v334_v16 = vpop.xlane.xlu1 %333  ;;  %v331_v17 = vpop.xlane.xlu0 %330 }
 0x11e   : > { %v346_v18 = vpop.xlane.xlu1 %345  ;;  %v343_v19 = vpop.xlane.xlu0 %342 }
 0x11f   : > { %v354_v20 = vadd.f32 %v346_v18, %v334_v16  ;;  %v353_v21 = vadd.f32 %v343_v19, %v331_v17 }
 0x121   : > { %v358_v22 = vmul.f32 0.0078125, %v354_v20  ;;  %v357_v23 = vmul.f32 0.0078125, %v353_v21 }
 0x122   : > { %v349_v24 = vpop.xlane.xlu1 %348  ;;  %v337_v25 = vpop.xlane.xlu0 %336 }
 0x123   : > { %v1413_v26 = vsub.f32 %v321_v0, %v358_v22  ;;  %v1415_v27 = vsub.f32 %v325_v2, %v358_v22  ;;  %v1417_v28 = vsub.f32 %v320_v1, %v357_v23  ;;  %v1419_v29 = vsub.f32 %v324_v5, %v357_v23  ;;  %v427_v0 = vld [vmem:[#allocation6 + $0x10] sm:$0xff]  ;;  %v428_v2 = vld [vmem:[#allocation6 + $0x18] sm:$0xff]  ;;  %v438_v5 = vld [vmem:[#allocation7 + $0x28] sm:$0xff] }
 0x124   : > { %v355_v30 = vadd.f32 %v349_v24, %v337_v25  ;;  %v867_v1 = vpack.c.bf16 %v436_v63, %v435_v62  ;;  %v883_v3 = vpack.c.bf16 %v428_v2, %v427_v0  ;;  %v871_v7 = vpack.c.bf16 %v438_v5, %v437_v4 }
 0x125   : > { %v385_v31 = vmul.f32 %v1419_v29, %v1419_v29  ;;  %v369_v32 = vmul.f32 %v1417_v28, %v1417_v28  ;;  %v386_v36 = vmul.f32 %v1415_v27, %v1415_v27  ;;  %v370_v40 = vmul.f32 %v1413_v26, %v1413_v26 }
 0x126   : > { %v359_v33 = vmul.f32 0.0078125, %v355_v30  ;;  %v352_v34 = vpop.xlane.xlu1 %351  ;;  %v340_v35 = vpop.xlane.xlu0 %339  ;;  %868 = vmatprep.subr.bf16.mxu1 %v867_v1  ;;  %884 = vmatprep.subr.bf16.mxu0 %v883_v3 }
 0x127   : > { %v389_v37 = vsel %vm328_vm0, %v385_v31, 0.0  ;;  %v373_v38 = vsel %vm328_vm0, %v369_v32, 0.0  ;;  %v356_v39 = vadd.f32 %v352_v34, %v340_v35  ;;  %v392_v48 = vsel %vm328_vm0, %v386_v36, 0.0  ;;  %870 = vmatpush3.bf16.msra.mxu1 %v867_v1  ;;  %886 = vmatpush3.bf16.msra.mxu0 %v883_v3 }
 0x128   : > { %v1431_v41 = vsub.f32 %v322_v9, %v359_v33  ;;  %v1433_v42 = vsub.f32 %v326_v8, %v359_v33  ;;  %390 = vadd.xlane.f32.xlu1 %v389_v37  ;;  %374 = vadd.xlane.f32.xlu0 %v373_v38  ;;  %v376_v49 = vsel %vm328_vm0, %v370_v40, 0.0  ;;  %v430_v8 = vld [vmem:[#allocation6 + $0x28] sm:$0xff] }
 0x129   : > { %v360_v43 = vmul.f32 0.0078125, %v356_v39  ;;  %v887_v9 = vpack.c.bf16 %v430_v8, %v429_v6  ;;  %872 = vmatprep.subr.bf16.mxu1 %v871_v7 }
 0x12a   : > { %v387_v44 = vmul.f32 %v1433_v42, %v1433_v42  ;;  %v371_v45 = vmul.f32 %v1431_v41, %v1431_v41 }
 0x12b   : > { %v1439_v46 = vsub.f32 %v323_v13, %v360_v43  ;;  %v1441_v47 = vsub.f32 %v327_v12, %v360_v43  ;;  %888 = vmatprep.subr.bf16.mxu0 %v887_v9  ;;  %874 = vmatpush3.bf16.msra.mxu1 %v871_v7  ;;  %v431_v12 = vld [vmem:[#allocation6 + $0x30] sm:$0xff]  ;;  %v875_v13 = vpack.c.bf16 %v440_v11, %v439_v10 }
 0x12c   : > { %393 = vadd.xlane.f32.xlu1 %v392_v48  ;;  %377 = vadd.xlane.f32.xlu0 %v376_v49  ;;  %v395_v50 = vsel %vm328_vm0, %v387_v44, 0.0  ;;  %v379_v51 = vsel %vm328_vm0, %v371_v45, 0.0  ;;  %v891_v15 = vpack.c.bf16 %v432_v14, %v431_v12 }
 0x12d   : > { %v388_v52 = vmul.f32 %v1441_v47, %v1441_v47  ;;  %v372_v53 = vmul.f32 %v1439_v46, %v1439_v46  ;;  %890 = vmatpush3.bf16.msra.mxu0 %v887_v9  ;;  %876 = vmatprep.subr.bf16.mxu1 %v875_v13 }
 0x12e   : > { %892 = vmatprep.subr.bf16.mxu0 %v891_v15 }
 0x12f   : > { %v398_v54 = vsel %vm328_vm0, %v388_v52, 0.0  ;;  %v382_v55 = vsel %vm328_vm0, %v372_v53, 0.0  ;;  %878 = vmatpush3.bf16.msra.mxu1 %v875_v13 }
 0x130   : > { %396 = vadd.xlane.f32.xlu1 %v395_v50  ;;  %380 = vadd.xlane.f32.xlu0 %v379_v51 }
 0x131   : > { %894 = vmatpush3.bf16.msra.mxu0 %v891_v15 }
 0x134   : > { %399 = vadd.xlane.f32.xlu1 %v398_v54  ;;  %383 = vadd.xlane.f32.xlu0 %v382_v55 }
 0x1b5   : > { %v391_v16 = vpop.xlane.xlu1 %390  ;;  %v375_v17 = vpop.xlane.xlu0 %374 }
 0x1b6   : > { %v401_v18 = vadd.f32 %v391_v16, %v375_v17 }
 0x1b8   : > { %v405_v19 = vmul.f32 0.0078125, %v401_v18 }
 0x1b9   : > { %v394_v20 = vpop.xlane.xlu1 %393  ;;  %v378_v21 = vpop.xlane.xlu0 %377 }
 0x1ba   : > { %v409_v22 = vadd.f32 1e-05, %v405_v19  ;;  %v402_v23 = vadd.f32 %v394_v20, %v378_v21 }
 0x1bc   : > { %967 = vrsqrt.f32 %v409_v22  ;;  %v406_v24 = vmul.f32 0.0078125, %v402_v23 }
 0x1bd   : > { %v397_v25 = vpop.xlane.xlu1 %396  ;;  %v381_v30 = vpop.xlane.xlu0 %380 }
 0x1be   : > { %v410_v31 = vadd.f32 1e-05, %v406_v24  ;;  %v403_v32 = vadd.f32 %v397_v25, %v381_v30 }
 0x1c0   : > { %969 = vrsqrt.f32 %v410_v31  ;;  %v407_v33 = vmul.f32 0.0078125, %v403_v32 }
 0x1c1   : > { %v400_v34 = vpop.xlane.xlu1 %399  ;;  %v384_v35 = vpop.xlane.xlu0 %383 }
 0x1c2   : > { %v411_v36 = vadd.f32 1e-05, %v407_v33  ;;  %v404_v37 = vadd.f32 %v400_v34, %v384_v35 }
 0x1c4   : > { %971 = vrsqrt.f32 %v411_v36  ;;  %v408_v38 = vmul.f32 0.0078125, %v404_v37 }
 0x1c6   : > { %v968_v39 = vpop.eup %967  ;;  %v412_v40 = vadd.f32 1e-05, %v408_v38 }
 0x1c7   : > { %v421_v43 = vmul.f32 %v968_v39, %v1419_v29  ;;  %v417_v44 = vmul.f32 %v968_v39, %v1417_v28 }
 0x1c8   : > { %973 = vrsqrt.f32 %v412_v40 }
 0x1c9   : > { %835 = vmatprep.mubr.msk.f32.mxu1 %vm328_vm0, %v421_v43  ;;  %857 = vmatprep.mubr.msk.f32.mxu0 %vm328_vm0, %v417_v44 }
 0x1ca   : > { %v970_v45 = vpop.eup %969 }
 0x1cb   : > { %v422_v48 = vmul.f32 %v970_v45, %v1415_v27  ;;  %v418_v49 = vmul.f32 %v970_v45, %v1413_v26 }
 0x1cd   : > { %836 = vmatmul.mubr.msk.f32.vlgmr.msra.gmra.mrb[0].mxu1 %vm328_vm0, %v422_v48  ;;  %858 = vmatmul.mubr.msk.f32.vlgmr.msra.gmra.mrb[0].mxu0 %vm328_vm0, %v418_v49 }
 0x1ce   : > { %v972_v50 = vpop.eup %971 }
 0x1cf   : > { %v423_v29 = vmul.f32 %v972_v50, %v1433_v42  ;;  %v419_v28 = vmul.f32 %v972_v50, %v1431_v41  ;;  %v789_v41 = vld [vmem:[%s1497_s4] ss:$0 sm:$0xff] }
 0x1d1   : > { %838 = vmatprep.mubr.msk.f32.mxu1 %vm328_vm0, %v423_v29  ;;  %860 = vmatprep.mubr.msk.f32.mxu0 %vm328_vm0, %v419_v28 }
 0x1d2   : > { %v974_v51 = vpop.eup %973 }
 0x1d3   : > { %v424_v52 = vmul.f32 %v974_v51, %v1441_v47  ;;  %v420_v27 = vmul.f32 %v974_v51, %v1439_v46 }
 0x1d5   : > { %839 = vmatmul.mubr.msk.f32.gmra.mrb[2].mxu1 %vm328_vm0, %v424_v52  ;;  %861 = vmatmul.mubr.msk.f32.gmra.mrb[2].mxu0 %vm328_vm0, %v420_v27 }
 0x2a0   : > { %v837_v26 = vpop.f32.mrb[0].mxu1  ;;  %v859_v42 = vpop.f32.mrb[0].mxu0 }
 0x2a1   : > { %v622_v53 = vadd.f32 %v859_v42, %v837_v26  ;;  %v519_v54 = vpop.f32.mrb[1].mxu1  ;;  %v616_v55 = vpop.f32.mrb[1].mxu0 }
 0x2a2   : > { %v617_v46 = vadd.f32 %v616_v55, %v519_v54 }
 0x2a3   : > { %v643_v47 = vadd.f32 %v789_v41, %v622_v53 }
 0x2a4   : > { %v642_v56 = vadd.f32 %v789_v41, %v617_v46 }
 0x2a5   : > { %647 = vst.msk [vmem:[%s318_s17 + $0x8] sm:$0xff] %vm328_vm0, %v643_v47 }
 0x2a6   : > { %646 = vst.msk [vmem:[%s318_s17] sm:$0xff] %vm328_vm0, %v642_v56 }
 0x2a8   : > { %v840_v57 = vpop.f32.mrb[2].mxu1  ;;  %v862_v58 = vpop.f32.mrb[2].mxu0 }
 0x2a9   : > { %v632_v59 = vadd.f32 %v862_v58, %v840_v57  ;;  %v529_v60 = vpop.f32.mrb[3].mxu1  ;;  %v626_v61 = vpop.f32.mrb[3].mxu0 }
 0x2aa   : > { %v627_v62 = vadd.f32 %v626_v61, %v529_v60 }
 0x2ab   : > { %v645_v63 = vadd.f32 %v789_v41, %v632_v59 }
 0x2ac   : > { %v644_v0 = vadd.f32 %v789_v41, %v627_v62 }
 0x2ad   : > { %649 = vst.msk [vmem:[%s318_s17 + $0x18] sm:$0xff] %vm328_vm0, %v645_v63 }
 0x2ae   : > { %648 = vst.msk [vmem:[%s318_s17 + $0x10] sm:$0xff] %vm328_vm0, %v644_v0 }
 0x2af PF: > { %p19_p8 = scmp.ge.s32.totalorder %s1199_s23, 6   ;;  %s1517_s18 = smov %s1130_s19 }
 0x2b0   : > { %s1518_s19 = smov %s1134_s20  ;;  %s1519_s20 = smov %s1209_s26 }
 0x2b1   : > { %s1520_s21 = smov %s1199_s23  ;;  %21 = sbr.rel (!%p19_p8) target bundleno = 8 (0x8), region = 101 }
 0x2b8   :  { %672 = vsyncpa [#allocation3], 1 }
 0x2b9   :  { %674 = vsyncpa [#allocation3 + $0x1], 1 }
 0x2ba   :  { %675 = vsyncpa [#allocation5], 1 }
 0x2bb   :  { %677 = vsyncpa [#allocation5 + $0x1], 1 }
 0x2bc   :  { %678 = vsyncpa [#allocation8], 1 }

</bundles_post_ra>
